<compile_context>
chip_gen: v7x
topology: tpu7x:2x2x1
jax: 0.10.0
libtpu: 0.0.40
codegen_flags: <defaults>
</compile_context>

<pallas_src>
import functools

import jax
import jax.numpy as jnp
import numpy as np
from jax.experimental import pallas as pl
from jax.experimental.pallas import tpu as pltpu

OUT_DIM = 512     # projection output dim (fixed in the PyTorch module)
LN_EPS = 1e-5     # nn.LayerNorm default eps


# ----------------------------- kernel ------------------------------------
def _extractor_kernel(inv_count,
                      keys_ref,                    # [K, TB, H]  f32
                      w1_ref, b1_ref,              # [H, H//2] bf16, [1, H//2] f32
                      w2_ref, b2_ref,              # [H//2, 512] bf16, [1, 512] f32
                      g_ref, beta_ref,             # [1, 512] f32 LayerNorm params
                      out_ref):                    # [TB, 512] f32
    # --- mask_focused pooling: sum of K pre-gathered key-token planes -----
    k_count = keys_ref.shape[0]
    pooled = keys_ref[0]
    for k in range(1, k_count):                    # static unroll, VPU adds
        pooled = pooled + keys_ref[k]
    pooled = pooled * inv_count                    # [TB, H] f32

    # --- Linear(H, H//2) -> ReLU  (Dropout = identity at inference) -------
    h1 = jnp.dot(pooled.astype(jnp.bfloat16), w1_ref[...],
                 preferred_element_type=jnp.float32) + b1_ref[...]
    h1 = jnp.maximum(h1, 0.0)

    # --- Linear(H//2, 512) -------------------------------------------------
    h2 = jnp.dot(h1.astype(jnp.bfloat16), w2_ref[...],
                 preferred_element_type=jnp.float32) + b2_ref[...]

    # --- LayerNorm(512) in f32 ---------------------------------------------
    mean = jnp.mean(h2, axis=-1, keepdims=True)
    var = jnp.mean((h2 - mean) ** 2, axis=-1, keepdims=True)
    out_ref[...] = ((h2 - mean) * jax.lax.rsqrt(var + LN_EPS)) * g_ref[...] + beta_ref[...]


# ----------------------------- wrapper ------------------------------------
def _key_positions(seq_len: int):
    if seq_len >= 7:
        return (0, seq_len // 8, seq_len // 4, seq_len // 2,
                3 * seq_len // 4, 7 * seq_len // 8, seq_len - 1)
    return tuple(range(seq_len))           # mean over all tokens


def _round_up(n: int, m: int) -> int:
    return (n + m - 1) // m * m


def mask_aware_feature_extractor(x, params, *, batch_tile=256):
    """x: [B, S, H] or [B, H] float32. Returns [B, 512] float32 features.

    batch_tile: batch rows per grid step (256 suits v6e/v7x's 2x256 MXU;
    pass 128 on v5e). Automatically shrunk / padded for small B.
    """
    w1, b1, w2, b2, ln_g, ln_b = params

    # Gather only the key token rows outside the kernel (static indices).
    if x.ndim == 2:
        keys = x[None, :, :]                                  # [1, B, H]
    else:
        kp = _key_positions(x.shape[1])
        keys = jnp.stack([x[:, i, :] for i in kp], axis=0)    # [K, B, H]
    K, B, H = keys.shape
    inv_count = 1.0 / float(K)

    # Batch tiling: TB multiple of 8 (sublane), pad B up to a multiple of TB.
    TB = min(int(batch_tile), _round_up(B, 8))
    B_pad = _round_up(B, TB)
    if B_pad != B:
        keys = jnp.pad(keys, ((0, 0), (0, B_pad - B), (0, 0)))

    grid = (B_pad // TB,)
    const2 = lambda i: (0, 0)                                 # weights: resident block

    kernel = functools.partial(_extractor_kernel, inv_count)
    out = pl.pallas_call(
        kernel,
        out_shape=jax.ShapeDtypeStruct((B_pad, OUT_DIM), jnp.float32),
        grid_spec=pltpu.PrefetchScalarGridSpec(
            num_scalar_prefetch=0,
            grid=grid,
            in_specs=[
                pl.BlockSpec((K, TB, H), lambda i: (0, i, 0)),   # key-token slab, batch-tiled
                pl.BlockSpec(w1.shape, const2),                  # weights stay in VMEM
                pl.BlockSpec(b1.shape, const2),
                pl.BlockSpec(w2.shape, const2),
                pl.BlockSpec(b2.shape, const2),
                pl.BlockSpec(ln_g.shape, const2),
                pl.BlockSpec(ln_b.shape, const2),
            ],
            out_specs=pl.BlockSpec((TB, OUT_DIM), lambda i: (i, 0)),
        ),
        compiler_params=pltpu.CompilerParams(
            dimension_semantics=("parallel",),       # batch axis -> megacore sharding
            vmem_limit_bytes=32 * 1024 * 1024,       # > v5e 16MiB default, safe on v7x 64MiB
        ),
    )(keys, w1, b1, w2, b2, ln_g, ln_b)
    return out[:B]


# -------------------- deterministic parameter init -----------------------
def _linear_params(key, fan_in, fan_out):
    kw, kb = jax.random.split(key)
    bound = 1.0 / np.sqrt(fan_in)
    w = jax.random.uniform(kw, (fan_in, fan_out), jnp.float32, -bound, bound)
    b = jax.random.uniform(kb, (1, fan_out), jnp.float32, -bound, bound)
    return w.astype(jnp.bfloat16), b       # bf16 weights, f32 biases


def init_params(hidden_dim, key):
    ks = jax.random.split(key, 2)
    w1, b1 = _linear_params(ks[0], hidden_dim, hidden_dim // 2)    # projection.0
    w2, b2 = _linear_params(ks[1], hidden_dim // 2, OUT_DIM)       # projection.3
    ln_g = jnp.ones((1, OUT_DIM), jnp.float32)                     # LayerNorm gamma
    ln_b = jnp.zeros((1, OUT_DIM), jnp.float32)                    # LayerNorm beta
    return (w1, b1, w2, b2, ln_g, ln_b)


# -------------------- pure-JAX reference (sanity check) -------------------
def _reference(x, params):
    w1, b1, w2, b2, ln_g, ln_b = params
    if x.ndim == 2:
        pooled = x
    else:
        kp = _key_positions(x.shape[1])
        pooled = jnp.mean(jnp.stack([x[:, i, :] for i in kp], axis=1), axis=1)
    h1 = jax.nn.relu(jnp.dot(pooled.astype(jnp.bfloat16), w1,
                             preferred_element_type=jnp.float32) + b1)
    h2 = jnp.dot(h1.astype(jnp.bfloat16), w2,
                 preferred_element_type=jnp.float32) + b2
    mean = jnp.mean(h2, axis=-1, keepdims=True)
    var = jnp.mean((h2 - mean) ** 2, axis=-1, keepdims=True)
    return ((h2 - mean) * jax.lax.rsqrt(var + LN_EPS)) * ln_g + ln_b


if __name__ == "__main__":
    key = jax.random.PRNGKey(0)
    k_x, k_p = jax.random.split(key)

    B, S, H = 2, 8, 32                       # small shapes: [batch, seq, hidden]
    x = jax.random.normal(k_x, (B, S, H), jnp.float32)
    params = init_params(H, k_p)

    out = mask_aware_feature_extractor(x, params)
    out = jax.block_until_ready(out)

    ref = _reference(x, params)
    assert out.shape == (B, OUT_DIM)
    np.testing.assert_allclose(np.asarray(out), np.asarray(ref), rtol=5e-3, atol=5e-3)

    print("KERNEL_OK")
</pallas_src>

<mosaic_0001>
module attributes {stable_mosaic.version = 11 : i64} {
  func.func @_extractor_kernel(%arg0: i32, %arg1: memref<7x8x32xf32, #tpu.memory_space<vmem>>, %arg2: memref<32x16xbf16, #tpu.memory_space<vmem>>, %arg3: memref<1x16xf32, #tpu.memory_space<vmem>>, %arg4: memref<16x512xbf16, #tpu.memory_space<vmem>>, %arg5: memref<1x512xf32, #tpu.memory_space<vmem>>, %arg6: memref<1x512xf32, #tpu.memory_space<vmem>>, %arg7: memref<1x512xf32, #tpu.memory_space<vmem>>, %arg8: memref<8x512xf32, #tpu.memory_space<vmem>>) attributes {dimension_semantics = [#tpu.dimension_semantics<parallel>], iteration_bounds = array<i64: 1>, scalar_prefetch = 0 : i64, scratch_operands = 0 : i64, tpu.core_type = #tpu.core_type<tc>, window_params = [{transform_indices = @transform_0, window_bounds = array<i64: 7, 8, 32>}, {pipeline_mode = #tpu.pipeline_mode<synchronous>, transform_indices = @transform_1, window_bounds = array<i64: 32, 16>}, {pipeline_mode = #tpu.pipeline_mode<synchronous>, transform_indices = @transform_2, window_bounds = array<i64: 1, 16>}, {pipeline_mode = #tpu.pipeline_mode<synchronous>, transform_indices = @transform_3, window_bounds = array<i64: 16, 512>}, {pipeline_mode = #tpu.pipeline_mode<synchronous>, transform_indices = @transform_4, window_bounds = array<i64: 1, 512>}, {pipeline_mode = #tpu.pipeline_mode<synchronous>, transform_indices = @transform_5, window_bounds = array<i64: 1, 512>}, {pipeline_mode = #tpu.pipeline_mode<synchronous>, transform_indices = @transform_6, window_bounds = array<i64: 1, 512>}, {transform_indices = @transform_7, window_bounds = array<i64: 8, 512>}]} {
    %c0 = arith.constant 0 : index
    %c0_0 = arith.constant 0 : index
    %c0_1 = arith.constant 0 : index
    %0 = vector.load %arg1[%c0, %c0_0, %c0_1] : memref<7x8x32xf32, #tpu.memory_space<vmem>>, vector<1x8x32xf32>
    %1 = vector.shape_cast %0 : vector<1x8x32xf32> to vector<8x32xf32>
    %c1 = arith.constant 1 : index
    %c0_2 = arith.constant 0 : index
    %c0_3 = arith.constant 0 : index
    %2 = vector.load %arg1[%c1, %c0_2, %c0_3] : memref<7x8x32xf32, #tpu.memory_space<vmem>>, vector<1x8x32xf32>
    %3 = vector.shape_cast %2 : vector<1x8x32xf32> to vector<8x32xf32>
    %4 = arith.addf %1, %3 : vector<8x32xf32>
    %c2 = arith.constant 2 : index
    %c0_4 = arith.constant 0 : index
    %c0_5 = arith.constant 0 : index
    %5 = vector.load %arg1[%c2, %c0_4, %c0_5] : memref<7x8x32xf32, #tpu.memory_space<vmem>>, vector<1x8x32xf32>
    %6 = vector.shape_cast %5 : vector<1x8x32xf32> to vector<8x32xf32>
    %7 = arith.addf %4, %6 : vector<8x32xf32>
    %c3 = arith.constant 3 : index
    %c0_6 = arith.constant 0 : index
    %c0_7 = arith.constant 0 : index
    %8 = vector.load %arg1[%c3, %c0_6, %c0_7] : memref<7x8x32xf32, #tpu.memory_space<vmem>>, vector<1x8x32xf32>
    %9 = vector.shape_cast %8 : vector<1x8x32xf32> to vector<8x32xf32>
    %10 = arith.addf %7, %9 : vector<8x32xf32>
    %c4 = arith.constant 4 : index
    %c0_8 = arith.constant 0 : index
    %c0_9 = arith.constant 0 : index
    %11 = vector.load %arg1[%c4, %c0_8, %c0_9] : memref<7x8x32xf32, #tpu.memory_space<vmem>>, vector<1x8x32xf32>
    %12 = vector.shape_cast %11 : vector<1x8x32xf32> to vector<8x32xf32>
    %13 = arith.addf %10, %12 : vector<8x32xf32>
    %c5 = arith.constant 5 : index
    %c0_10 = arith.constant 0 : index
    %c0_11 = arith.constant 0 : index
    %14 = vector.load %arg1[%c5, %c0_10, %c0_11] : memref<7x8x32xf32, #tpu.memory_space<vmem>>, vector<1x8x32xf32>
    %15 = vector.shape_cast %14 : vector<1x8x32xf32> to vector<8x32xf32>
    %16 = arith.addf %13, %15 : vector<8x32xf32>
    %c6 = arith.constant 6 : index
    %c0_12 = arith.constant 0 : index
    %c0_13 = arith.constant 0 : index
    %17 = vector.load %arg1[%c6, %c0_12, %c0_13] : memref<7x8x32xf32, #tpu.memory_space<vmem>>, vector<1x8x32xf32>
    %18 = vector.shape_cast %17 : vector<1x8x32xf32> to vector<8x32xf32>
    %19 = arith.addf %16, %18 : vector<8x32xf32>
    %cst = arith.constant 0.142857149 : f32
    %20 = vector.broadcast %cst : f32 to vector<8x32xf32>
    %21 = arith.mulf %19, %20 : vector<8x32xf32>
    %22 = arith.truncf %21 : vector<8x32xf32> to vector<8x32xbf16>
    %c0_14 = arith.constant 0 : index
    %c0_15 = arith.constant 0 : index
    %23 = vector.load %arg2[%c0_14, %c0_15] : memref<32x16xbf16, #tpu.memory_space<vmem>>, vector<32x16xbf16>
    %cst_16 = arith.constant dense<0.000000e+00> : vector<8x16xf32>
    %24 = tpu.matmul %22, %23, %cst_16 {dimension_numbers = #tpu.dot_dimension_numbers<[1], [0], [0], [1], [0, 0, 1, 1], [], []>} : vector<8x32xbf16>, vector<32x16xbf16>, vector<8x16xf32> -> vector<8x16xf32>
    %c0_17 = arith.constant 0 : index
    %c0_18 = arith.constant 0 : index
    %25 = vector.load %arg3[%c0_17, %c0_18] : memref<1x16xf32, #tpu.memory_space<vmem>>, vector<1x16xf32>
    %26 = vector.broadcast %25 : vector<1x16xf32> to vector<8x16xf32>
    %27 = arith.addf %24, %26 : vector<8x16xf32>
    %cst_19 = arith.constant 0.000000e+00 : f32
    %28 = vector.broadcast %cst_19 : f32 to vector<8x16xf32>
    %29 = arith.maximumf %27, %28 : vector<8x16xf32>
    %30 = arith.truncf %29 : vector<8x16xf32> to vector<8x16xbf16>
    %c0_20 = arith.constant 0 : index
    %c0_21 = arith.constant 0 : index
    %31 = vector.load %arg4[%c0_20, %c0_21] : memref<16x512xbf16, #tpu.memory_space<vmem>>, vector<16x512xbf16>
    %cst_22 = arith.constant dense<0.000000e+00> : vector<8x512xf32>
    %32 = tpu.matmul %30, %31, %cst_22 {dimension_numbers = #tpu.dot_dimension_numbers<[1], [0], [0], [1], [0, 0, 1, 1], [], []>} : vector<8x16xbf16>, vector<16x512xbf16>, vector<8x512xf32> -> vector<8x512xf32>
    %c0_23 = arith.constant 0 : index
    %c0_24 = arith.constant 0 : index
    %33 = vector.load %arg5[%c0_23, %c0_24] : memref<1x512xf32, #tpu.memory_space<vmem>>, vector<1x512xf32>
    %34 = vector.broadcast %33 : vector<1x512xf32> to vector<8x512xf32>
    %35 = arith.addf %32, %34 : vector<8x512xf32>
    %cst_25 = arith.constant dense<0.000000e+00> : vector<8xf32>
    %36 = vector.multi_reduction <add>, %35, %cst_25 [1] : vector<8x512xf32> to vector<8xf32>
    %37 = vector.shape_cast %36 : vector<8xf32> to vector<8x1xf32>
    %cst_26 = arith.constant 5.120000e+02 : f32
    %38 = vector.broadcast %cst_26 : f32 to vector<8x1xf32>
    %39 = arith.divf %37, %38 : vector<8x1xf32>
    %40 = vector.broadcast %39 : vector<8x1xf32> to vector<8x512xf32>
    %41 = arith.subf %35, %40 : vector<8x512xf32>
    %42 = arith.mulf %41, %41 : vector<8x512xf32>
    %cst_27 = arith.constant dense<0.000000e+00> : vector<8xf32>
    %43 = vector.multi_reduction <add>, %42, %cst_27 [1] : vector<8x512xf32> to vector<8xf32>
    %44 = vector.shape_cast %43 : vector<8xf32> to vector<8x1xf32>
    %cst_28 = arith.constant 5.120000e+02 : f32
    %45 = vector.broadcast %cst_28 : f32 to vector<8x1xf32>
    %46 = arith.divf %44, %45 : vector<8x1xf32>
    %47 = vector.broadcast %39 : vector<8x1xf32> to vector<8x512xf32>
    %48 = arith.subf %35, %47 : vector<8x512xf32>
    %cst_29 = arith.constant 9.99999974E-6 : f32
    %49 = vector.broadcast %cst_29 : f32 to vector<8x1xf32>
    %50 = arith.addf %46, %49 : vector<8x1xf32>
    %51 = math.rsqrt %50 : vector<8x1xf32>
    %52 = vector.broadcast %51 : vector<8x1xf32> to vector<8x512xf32>
    %53 = arith.mulf %48, %52 : vector<8x512xf32>
    %c0_30 = arith.constant 0 : index
    %c0_31 = arith.constant 0 : index
    %54 = vector.load %arg6[%c0_30, %c0_31] : memref<1x512xf32, #tpu.memory_space<vmem>>, vector<1x512xf32>
    %55 = vector.broadcast %54 : vector<1x512xf32> to vector<8x512xf32>
    %56 = arith.mulf %53, %55 : vector<8x512xf32>
    %c0_32 = arith.constant 0 : index
    %c0_33 = arith.constant 0 : index
    %57 = vector.load %arg7[%c0_32, %c0_33] : memref<1x512xf32, #tpu.memory_space<vmem>>, vector<1x512xf32>
    %58 = vector.broadcast %57 : vector<1x512xf32> to vector<8x512xf32>
    %59 = arith.addf %56, %58 : vector<8x512xf32>
    %c0_34 = arith.constant 0 : index
    %c0_35 = arith.constant 0 : index
    %60 = vector.load %arg8[%c0_34, %c0_35] : memref<8x512xf32, #tpu.memory_space<vmem>>, vector<8x512xf32>
    tpu.vector_store %arg8[%c0_34, %c0_35], %59 {strides = array<i32>} : memref<8x512xf32, #tpu.memory_space<vmem>>, vector<8x512xf32>,
    return
  }
  func.func @transform_0(%arg0: i32) -> (i32, i32, i32) {
    %c0_i32 = arith.constant 0 : i32
    %c0_i32_0 = arith.constant 0 : i32
    %c0_i32_1 = arith.constant 0 : i32
    return %c0_i32, %arg0, %c0_i32_0 : i32, i32, i32
  }
  func.func @transform_1(%arg0: i32) -> (i32, i32) {
    %c0_i32 = arith.constant 0 : i32
    %c0_i32_0 = arith.constant 0 : i32
    %c0_i32_1 = arith.constant 0 : i32
    return %c0_i32, %c0_i32_0 : i32, i32
  }
  func.func @transform_2(%arg0: i32) -> (i32, i32) {
    %c0_i32 = arith.constant 0 : i32
    %c0_i32_0 = arith.constant 0 : i32
    %c0_i32_1 = arith.constant 0 : i32
    return %c0_i32, %c0_i32_0 : i32, i32
  }
  func.func @transform_3(%arg0: i32) -> (i32, i32) {
    %c0_i32 = arith.constant 0 : i32
    %c0_i32_0 = arith.constant 0 : i32
    %c0_i32_1 = arith.constant 0 : i32
    return %c0_i32, %c0_i32_0 : i32, i32
  }
  func.func @transform_4(%arg0: i32) -> (i32, i32) {
    %c0_i32 = arith.constant 0 : i32
    %c0_i32_0 = arith.constant 0 : i32
    %c0_i32_1 = arith.constant 0 : i32
    return %c0_i32, %c0_i32_0 : i32, i32
  }
  func.func @transform_5(%arg0: i32) -> (i32, i32) {
    %c0_i32 = arith.constant 0 : i32
    %c0_i32_0 = arith.constant 0 : i32
    %c0_i32_1 = arith.constant 0 : i32
    return %c0_i32, %c0_i32_0 : i32, i32
  }
  func.func @transform_6(%arg0: i32) -> (i32, i32) {
    %c0_i32 = arith.constant 0 : i32
    %c0_i32_0 = arith.constant 0 : i32
    %c0_i32_1 = arith.constant 0 : i32
    return %c0_i32, %c0_i32_0 : i32, i32
  }
  func.func @transform_7(%arg0: i32) -> (i32, i32) {
    %c0_i32 = arith.constant 0 : i32
    %c0_i32_0 = arith.constant 0 : i32
    return %arg0, %c0_i32 : i32, i32
  }
}

</mosaic_0001>

<bundles_post_ra>
// kernel: tpu_custom_call.1
= control target key start
LH: loop header
LB: loop body
LE: loop exit
PB: predicated region body
PF: predicated region fallthrough
CT: control target
= control target key end

     0   :  { %12 = vsyncpa [#allocation3], 0  ;;  %s559_s0 = inlined_call_operand.hbm [shape: f32[7,8,32], index: 0, kind: input, shape index: {}]   ;;  %s560_s1 = inlined_call_operand.vmem [shape: bf16[32,16], index: 1, kind: input, shape index: {}]   ;;  %s561_s2 = inlined_call_operand.vmem [shape: f32[1,16], index: 2, kind: input, shape index: {}]   ;;  %s562_s3 = inlined_call_operand.vmem [shape: bf16[16,512], index: 3, kind: input, shape index: {}]   ;;  %s563_s4 = inlined_call_operand.vmem [shape: f32[1,512], index: 4, kind: input, shape index: {}]   ;;  %s564_s5 = inlined_call_operand.vmem [shape: f32[1,512], index: 5, kind: input, shape index: {}]   ;;  %s565_s6 = inlined_call_operand.vmem [shape: f32[1,512], index: 6, kind: input, shape index: {}]   ;;  %s566_s7 = inlined_call_operand.hbm [shape: f32[8,512], index: 7, kind: output, shape index: {}]  }
   0x1   :  { %13 = vsyncpa [#allocation4], 0  ;;  %s448_s24 = smov [#allocation2]   ;;  %s400_s28 = scalar_lea.hbm %s559_s0, 896 }
   0x2   :  { %s19_s25 = sshll.u32 %s448_s24, 4  ;;  %p401_p0 = scmp.ne.s32.totalorder %s559_s0, %s400_s28  ;;  %s20_s25 = int_to_ptr.vmem [resolvable:$true] %s19_s25 }
   0x3   :  { %p404_p1 = scmp.lt.u32.totalorder %s400_s28, %s559_s0 }
   0x5   :  { %p406_p2 = pnand %p404_p1, %p401_p0 }
   0x7   :  { %409 = shalt.err (!%p406_p2)
}
   0x8   :  { %s410_s10 = scalar_lea.vmem %s20_s25, 896  ;;  %p415_p4 = scmp.lt.s32.totalorder %s20_s25, %s20_s25 }
   0x9   :  { %p411_p3 = scmp.ne.s32.totalorder %s20_s25, %s410_s10  ;;  %p416_p5 = scmp.lt.s32.totalorder %s410_s10, %s410_s10 }
   0xb   :  { %p417_p6 = por %p416_p5, %p415_p4 }
   0xd   :  { %p418_p7 = pnand %p417_p6, %p411_p3 }
   0xf   :  { %421 = shalt.err (!%p418_p7)
}
  0x10   :  { %s449_s11 = smov 128   ;;  %s450_s12 = smov 8  }
  0x11   :  { %25 = dma.hbm_to_vmem [thread:$0]  %s559_s0, 896, %s20_s25, [#allocation3], %s449_s11, %s449_s11, %s450_s12  }
  0x12   :  { %444 = dma.done.wait [#allocation3], 896  }
  0x13   :  { %445 = vsyncadd [#allocation3], 4294966400  ;;  %v451_v0 = vmov 0.0   ;;  %vm452_vm0 = vmmov 0   ;;  %v390_v1 = vld [vmem:[%s560_s1] sm:$0xff]   ;;  %v391_v2 = vld [vmem:[%s560_s1 + $0x8] sm:$0xff]   ;;  %v138_v31 = vlaneseq }
  0x14   :  { %375 = vmatprep.subr.bf16.mxu0 %v451_v0  ;;  %379 = vmatprep.mubr.msk.bf16.mxu0 %vm452_vm0, %v451_v0  ;;  %v42_v3 = vld [vmem:[#allocation2] sm:$0xff]  ;;  %v44_v4 = vld [vmem:[#allocation2 + $0x8] sm:$0xff]  ;;  %v47_v5 = vld [vmem:[#allocation2 + $0x10] sm:$0xff]  ;;  %vm86_vm1 = vcmask 261120   ;;  %v453_v21 = vmov 0   ;;  %vm178_vm2 = vcmask 130048  }
  0x15   :  { %376 = vmatpush3.bf16.msra.mxu0 %v390_v1  ;;  %v45_v6 = vadd.f32 %v44_v4, %v42_v3  ;;  %v50_v7 = vld [vmem:[#allocation2 + $0x18] sm:$0xff]  ;;  %v53_v9 = vld [vmem:[#allocation2 + $0x20] sm:$0xff]  ;;  %v56_v11 = vld [vmem:[#allocation2 + $0x28] sm:$0xff]  ;;  %214 = vmatprep.mubr.bf16.mxu1 %v453_v21  ;;  %v139_v32 = vshrl.u32 %v138_v31, 7 }
  0x16   :  { %377 = vmatprep.subr.bf16.mxu0 %v451_v0  ;;  %v59_v13 = vld [vmem:[#allocation2 + $0x30] sm:$0xff]  ;;  %v397_v20 = vld [vmem:[%s562_s3 + $0xc] ss:$16 sps:$4 sm:$0xff]   ;;  %v362_v22 = vld [vmem:[%s561_s2] ss:$0 sm:$0xff] }
  0x17   :  { %v48_v8 = vadd.f32 %v47_v5, %v45_v6  ;;  %v392_v18 = vld [vmem:[%s562_s3 + $0x4] ss:$16 sps:$4 sm:$0xff]   ;;  %v394_v19 = vld [vmem:[%s562_s3] ss:$16 sps:$4 sm:$0xff]   ;;  %v395_v29 = vld [vmem:[%s562_s3 + $0x8] ss:$16 sps:$4 sm:$0xff]  }
  0x18   :  { %182 = vmatprep.subr.bf16.mxu1 %v392_v18  ;;  %v528_v33 = vsub.s32 0, %v139_v32  ;;  %v530_v34 = vsub.s32 1, %v139_v32  ;;  %v136_v35 = vld [vmem:[%s563_s4] sm:$0xf]  ;;  %v148_v40 = vsub.s32 2, %v139_v32  ;;  %v152_v42 = vsub.s32 3, %v139_v32 }
  0x19   :  { %378 = vmatpush3.bf16.msra.mxu0 %v391_v2  ;;  %v51_v10 = vadd.f32 %v50_v7, %v48_v8  ;;  %183 = vmatpush1.bf16.msra.mxu1 %v394_v19 }
  0x1a   :  { %223 = vmatprep.subr.bf16.mxu1 %v397_v20  ;;  %v141_v37 = vrot.slane %v136_v35, %v528_v33  ;;  %v145_v38 = vrot.slane %v136_v35, %v530_v34  ;;  %v149_v46 = vrot.slane %v136_v35, %v148_v40  ;;  %v153_v47 = vrot.slane %v136_v35, %v152_v42 }
  0x1b   :  { %v54_v12 = vadd.f32 %v53_v9, %v51_v10  ;;  %v291_v9 = vld [vmem:[%s564_s5] sm:$0xf]  ;;  %s454_s5 = smov [#allocation5]  }
  0x1c   :  { %v317_v10 = vld [vmem:[%s565_s6] sm:$0xf]  ;;  %s353_s30 = sshll.u32 %s454_s5, 4  ;;  %s354_s30 = int_to_ptr.vmem [resolvable:$true] %s353_s30 }
  0x1d   :  { %v57_v14 = vadd.f32 %v56_v11, %v54_v12  ;;  %v296_v11 = vrot.slane %v291_v9, %v528_v33  ;;  %v300_v12 = vrot.slane %v291_v9, %v530_v34  ;;  %v330_v18 = vrot.slane %v317_v10, %v148_v40  ;;  %s422_s6 = scalar_lea.vmem %s354_s30, 512  ;;  %p427_p9 = scmp.lt.s32.totalorder %s354_s30, %s354_s30 }
  0x1e   :  { %v334_v19 = vrot.slane %v317_v10, %v152_v42  ;;  %p423_p8 = scmp.ne.s32.totalorder %s354_s30, %s422_s6  ;;  %p428_p10 = scmp.lt.s32.totalorder %s422_s6, %s422_s6 }
  0x1f   :  { %v60_v15 = vadd.f32 %v59_v13, %v57_v14  ;;  %v304_v13 = vrot.slane %v291_v9, %v148_v40  ;;  %v308_v14 = vrot.slane %v291_v9, %v152_v42 }
  0x20   :  { %p429_p11 = por %p428_p10, %p427_p9 }
  0x21   :  { %v61_v16 = vmul.f32 0.14285715, %v60_v15 }
  0x22   :  { %p430_p12 = pnand %p429_p11, %p423_p8 }
  0x23   :  { %v62_v17 = vpack.c.bf16 %v61_v16, %v61_v16  ;;  %v322_v16 = vrot.slane %v317_v10, %v528_v33 }
  0x25   :  { %380 = vmatmul.mubr.msk.bf16.vlgmr.msra.gmra.mrb[0].mxu0 %vm86_vm1, %v62_v17  ;;  %v326_v17 = vrot.slane %v317_v10, %v530_v34 }
  0xf8   :  { %v124_v23 = vpop.f32.mrb[0].mxu0 }
  0xf9   :  { %v125_v24 = vadd.f32 %v362_v22, %v124_v23  ;;  %v381_v25 = vpop.f32.mrb[1].mxu0 }
  0xfa   :  { %v127_v26 = vpop.f32.mrb[2].mxu0 }
  0xfb   :  { %v130_v27 = vmax.f32 %v125_v24, 0.0  ;;  %v382_v28 = vpop.f32.mrb[3].mxu0 }
  0xfd   :  { %v131_v30 = vpack.c.bf16 %v130_v27, %v130_v27 }
  0xff   :  { %370 = vmatmul.mubr.msk.bf16.vlgmr.msra.gmra.mrb[0].mxu1 %vm178_vm2, %v131_v30 }
 0x100   :  { %224 = vmatpush1.bf16.msra.mxu1 %v395_v29  ;;  %255 = vmatprep.mubr.bf16.mxu1 %v453_v21 }
 0x107   :  { %371 = vmatmul.mubr.msk.bf16.vlgmr.msra.gmra.mrb[4].mxu1 %vm178_vm2, %v131_v30 }
 0x1d2   :  { %v216_v36 = vpop.f32.mrb[0].mxu1 }
 0x1d3   :  { %v218_v39 = vpop.f32.mrb[1].mxu1  ;;  %v217_v44 = vadd.f32 %v216_v36, %v141_v37 }
 0x1d4   :  { %v220_v41 = vpop.f32.mrb[2].mxu1  ;;  %v219_v45 = vadd.f32 %v218_v39, %v145_v38 }
 0x1d5   :  { %v221_v43 = vpop.f32.mrb[3].mxu1 }
 0x1d6   :  { %v264_v49 = vadd.f32 %v219_v45, %v217_v44 }
 0x1da   :  { %v257_v48 = vpop.f32.mrb[4].mxu1 }
 0x1db   :  { %v258_v50 = vadd.f32 %v257_v48, %v149_v46  ;;  %v259_v51 = vpop.f32.mrb[5].mxu1 }
 0x1dc   :  { %v260_v52 = vadd.f32 %v259_v51, %v153_v47  ;;  %v261_v53 = vpop.f32.mrb[6].mxu1 }
 0x1dd   :  { %v262_v54 = vpop.f32.mrb[7].mxu1  ;;  %v265_v55 = vadd.f32 %v264_v49, %v258_v50 }
 0x1df   :  { %v266_v56 = vadd.f32 %v265_v55, %v260_v52 }
 0x1e1   :  { %267 = vadd.xlane.f32.xlu0 %v266_v56 }
 0x26e   :  { %v268_v57 = vpop.xlane.xlu0 %267 }
 0x26f   :  { %v270_v58 = vmul.f32 0.001953125, %v268_v57 }
 0x271   :  { %v271_v59 = vsub.f32 %v217_v44, %v270_v58  ;;  %v272_v60 = vsub.f32 %v219_v45, %v270_v58  ;;  %v273_v61 = vsub.f32 %v258_v50, %v270_v58  ;;  %v274_v62 = vsub.f32 %v260_v52, %v270_v58 }
 0x273   :  { %v275_v63 = vmul.f32 %v271_v59, %v271_v59  ;;  %v276_v0 = vmul.f32 %v272_v60, %v272_v60  ;;  %v277_v1 = vmul.f32 %v273_v61, %v273_v61  ;;  %v278_v3 = vmul.f32 %v274_v62, %v274_v62 }
 0x275   :  { %v279_v2 = vadd.f32 %v276_v0, %v275_v63 }
 0x277   :  { %v280_v4 = vadd.f32 %v279_v2, %v277_v1 }
 0x279   :  { %v281_v5 = vadd.f32 %v280_v4, %v278_v3 }
 0x27b   :  { %282 = vadd.xlane.f32.xlu0 %v281_v5 }
 0x308   :  { %v283_v6 = vpop.xlane.xlu0 %282 }
 0x309   :  { %v284_v7 = vmul.f32 0.001953125, %v283_v6 }
 0x30b   :  { %v285_v8 = vadd.f32 1e-05, %v284_v7 }
 0x30d   :  { %398 = vrsqrt.f32 %v285_v8 }
 0x317   :  { %v399_v15 = vpop.eup %398 }
 0x318   :  { %v287_v20 = vmul.f32 %v399_v15, %v271_v59  ;;  %v288_v21 = vmul.f32 %v399_v15, %v272_v60  ;;  %v289_v22 = vmul.f32 %v399_v15, %v273_v61  ;;  %v290_v23 = vmul.f32 %v399_v15, %v274_v62 }
 0x31a   :  { %v313_v24 = vmul.f32 %v296_v11, %v287_v20  ;;  %v314_v25 = vmul.f32 %v300_v12, %v288_v21  ;;  %v315_v26 = vmul.f32 %v304_v13, %v289_v22  ;;  %v316_v27 = vmul.f32 %v308_v14, %v290_v23 }
 0x31c   :  { %v339_v28 = vadd.f32 %v322_v16, %v313_v24  ;;  %v340_v29 = vadd.f32 %v326_v17, %v314_v25  ;;  %v341_v30 = vadd.f32 %v330_v18, %v315_v26  ;;  %v342_v31 = vadd.f32 %v334_v19, %v316_v27 }
 0x31e   :  { %343 = vst [vmem:[#allocation5] sm:$0xff] %v339_v28  ;;  %344 = vst [vmem:[#allocation5 + $0x8] sm:$0xff] %v340_v29 }
 0x31f   :  { %345 = vst [vmem:[#allocation5 + $0x10] sm:$0xff] %v341_v30  ;;  %346 = vst [vmem:[#allocation5 + $0x18] sm:$0xff] %v342_v31 }
 0x320   :  { %433 = shalt.err (!%p430_p12)
}
 0x321   :  { %s434_s10 = scalar_lea.hbm %s566_s7, 512 }
 0x322   :  { %p435_p13 = scmp.ne.s32.totalorder %s566_s7, %s434_s10  ;;  %p438_p0 = scmp.lt.u32.totalorder %s434_s10, %s566_s7 }
 0x324   :  { %p440_p1 = pnand %p438_p0, %p435_p13 }
 0x326   :  { %443 = shalt.err (!%p440_p1)
}
 0x327   :  { %356 = dma.vmem_to_hbm [thread:$0]  %s354_s30, 512, %s566_s7, [#allocation4]  }
 0x328   :  { %446 = dma.done.wait [#allocation4], 512  }
 0x329   :  { %447 = vsyncadd [#allocation4], 4294966784 }
 0x32a   :  { %360 = vsyncpa [#allocation3], 1 }
 0x32b   :  { %361 = vsyncpa [#allocation4], 1 }

</bundles_post_ra>
